<compile_context>
chip_gen: v6e
topology: v6e:2x2x1
jax: 0.10.0
libtpu: 0.0.40
codegen_flags: <defaults>
</compile_context>

<pallas_src>
import jax
import jax.numpy as jnp
from jax.experimental import pallas as pl
from jax.experimental.pallas import tpu as pltpu

HIDDEN = 256        # hidden_lay_1 == hidden_lay_2 == 256
Q_ROWS = 8          # q head padded from 1 -> 8 sublane rows (MXU/sublane granularity)
MAX_TILE_B = 2048   # batch tile cap; intermediates fit v5e's 16 MiB scoped VMEM
LANE = 128          # batch tile alignment so the (1, tile_b) output store is lane-dense


def _round_up(x, m):
    return ((x + m - 1) // m) * m


def critic_forward_kernel(xs_ref, xa_ref, w1s_ref, w1a_ref, b1_ref,
                          w2_ref, b2_ref, wq_ref, bq_ref, q_ref):
    """Fused critic forward on one (tile_b,) batch tile.

    [state;action] -> ReLU(fc1) -> ReLU(fc2) -> q, with the q head computed
    transposed so the stored output is (1, tile_b) (lane-dense along batch).
    """
    # Layer 1: tiny K (state_dim + action_dim), keep f32 end-to-end.
    h1 = (jnp.dot(xs_ref[...], w1s_ref[...], preferred_element_type=jnp.float32)
          + jnp.dot(xa_ref[...], w1a_ref[...], preferred_element_type=jnp.float32)
          + b1_ref[...])
    h1 = jnp.maximum(h1, 0.0)

    # Layer 2: bf16 operands on the MXU, f32 accumulation.
    h2 = jnp.dot(h1.astype(jnp.bfloat16), w2_ref[...],
                 preferred_element_type=jnp.float32) + b2_ref[...]
    h2 = jnp.maximum(h2, 0.0)

    # q head, transposed: (Q_ROWS, tile_b) = wq_t (Q_ROWS, H) . h2 (tile_b, H)^T.
    # Only row 0 of wq_t is real; rows 1..7 are zero padding.
    q_t = jax.lax.dot_general(
        wq_ref[...], h2.astype(jnp.bfloat16),
        dimension_numbers=(((1,), (1,)), ((), ())),
        preferred_element_type=jnp.float32)
    q_ref[...] = q_t[0:1, :] + bq_ref[0]


@jax.jit
def critic_forward(state, action, params):
    """state: (B, state_dim) f32, action: (B, action_dim) f32 -> q: (B, 1) f32."""
    w1s, w1a, b1, w2, b2, wqt, bq = params
    state = state.astype(jnp.float32)
    action = action.astype(jnp.float32)
    B, state_dim = state.shape
    action_dim = action.shape[1]

    # >= 2 grid steps (megacore on v7x) unless the batch fits in one 128-row tile;
    # tile_b ~ B / num_tiles, rounded to 128 so the output block is lane-dense.
    num_tiles = max(2, pl.cdiv(B, MAX_TILE_B))
    tile_b = min(MAX_TILE_B, _round_up(pl.cdiv(B, num_tiles), LANE))
    Bp = _round_up(B, tile_b)
    if Bp != B:
        state = jnp.pad(state, ((0, Bp - B), (0, 0)))
        action = jnp.pad(action, ((0, Bp - B), (0, 0)))
    grid = (Bp // tile_b,)

    D = state_dim + action_dim
    flops = 2 * Bp * (D * HIDDEN + HIDDEN * HIDDEN + HIDDEN * Q_ROWS)
    bytes_accessed = (
        Bp * D * 4                                    # state/action tiles in (f32)
        + D * HIDDEN * 4                              # layer-1 weights (f32)
        + (HIDDEN * HIDDEN + Q_ROWS * HIDDEN) * 2     # bf16 weights
        + (2 * HIDDEN + 1) * 4                        # f32 biases
        + Bp * 4                                      # compact (1, Bp) f32 output
    )

    q_row = pl.pallas_call(
        critic_forward_kernel,
        out_shape=jax.ShapeDtypeStruct((1, Bp), jnp.float32),
        grid=grid,
        in_specs=[
            pl.BlockSpec((tile_b, state_dim), lambda i: (i, 0)),    # state tile
            pl.BlockSpec((tile_b, action_dim), lambda i: (i, 0)),   # action tile
            pl.BlockSpec((state_dim, HIDDEN), lambda i: (0, 0)),    # W1_s (VMEM-resident)
            pl.BlockSpec((action_dim, HIDDEN), lambda i: (0, 0)),   # W1_a
            pl.BlockSpec((1, HIDDEN), lambda i: (0, 0)),            # b1
            pl.BlockSpec((HIDDEN, HIDDEN), lambda i: (0, 0)),       # W2 (bf16)
            pl.BlockSpec((1, HIDDEN), lambda i: (0, 0)),            # b2
            pl.BlockSpec((Q_ROWS, HIDDEN), lambda i: (0, 0)),       # Wq^T (bf16, padded rows)
            pl.BlockSpec(memory_space=pltpu.MemorySpace.SMEM),      # bq scalar
        ],
        out_specs=pl.BlockSpec((1, tile_b), lambda i: (0, i)),      # lane-dense along batch
        compiler_params=pltpu.CompilerParams(
            dimension_semantics=("parallel",)),                     # megacore on v7x
        cost_estimate=pl.CostEstimate(
            flops=flops, transcendentals=0, bytes_accessed=bytes_accessed),
    )(state, action, w1s, w1a, b1, w2, b2, wqt, bq)

    return q_row[0, :B].reshape(B, 1)


def init_critic_params(key, state_dim, action_dim):
    """torch.nn.Linear-style init: U(-1/sqrt(fan_in), 1/sqrt(fan_in)).

    W1 is generated on the concatenated input then split into state/action
    halves (kept f32, tiny).  W2 is (in, out) bf16.  Wq is stored transposed
    (1, HIDDEN), zero-padded to Q_ROWS sublane rows, bf16.  bq is a scalar
    kept in SMEM.  Biases are f32 (added after f32 accumulation).
    """
    def linear(k, fan_in, fan_out):
        kw, kb = jax.random.split(k)
        bound = 1.0 / jnp.sqrt(fan_in)
        w = jax.random.uniform(kw, (fan_in, fan_out), jnp.float32, -bound, bound)
        b = jax.random.uniform(kb, (1, fan_out), jnp.float32, -bound, bound)
        return w, b

    k1, k2, k3 = jax.random.split(key, 3)
    in_dim = state_dim + action_dim
    w1, b1 = linear(k1, in_dim, HIDDEN)
    w2, b2 = linear(k2, HIDDEN, HIDDEN)
    wq, bq = linear(k3, HIDDEN, 1)

    w1s = w1[:state_dim]                       # (state_dim, HIDDEN) f32
    w1a = w1[state_dim:]                       # (action_dim, HIDDEN) f32
    wqt = jnp.pad(wq.T, ((0, Q_ROWS - 1), (0, 0)))   # (Q_ROWS, HIDDEN), row 0 real
    bq_scalar = bq.reshape((1,))               # (1,) f32, lives in SMEM

    return (w1s, w1a, b1,
            w2.astype(jnp.bfloat16), b2,
            wqt.astype(jnp.bfloat16), bq_scalar)


def critic_forward_ref(state, action, params):
    """Pure-JAX reference (same bf16-rounded W2/Wq, f32 math)."""
    w1s, w1a, b1, w2, b2, wqt, bq = params
    x = jnp.concatenate([state, action], axis=1).astype(jnp.float32)
    w1 = jnp.concatenate([w1s, w1a], axis=0)
    h1 = jnp.maximum(x @ w1 + b1, 0.0)
    h2 = jnp.maximum(h1 @ w2.astype(jnp.float32) + b2, 0.0)
    q = h2 @ wqt.astype(jnp.float32)[0:1, :].T + bq[0]
    return q


if __name__ == "__main__":
    key = jax.random.PRNGKey(0)
    k_state, k_action, k_params = jax.random.split(key, 3)

    batch = 2
    state_dim = 8
    action_dim = 4

    state = jax.random.normal(k_state, (batch, state_dim), jnp.float32)
    action = jax.random.normal(k_action, (batch, action_dim), jnp.float32)
    params = init_critic_params(k_params, state_dim, action_dim)

    q = critic_forward(state, action, params)
    jax.block_until_ready(q)

    q_ref = critic_forward_ref(state, action, params)
    assert q.shape == (batch, 1)
    # bf16 hidden-layer weights/activations on the MXU vs f32 reference
    # (and vs a PyTorch f32 CriticNetwork) -> loose tolerance by design.
    assert jnp.allclose(q, q_ref, atol=2e-2, rtol=2e-2), (q, q_ref)

    # TODO(synk): GenericNetwork checkpoint/optimizer plumbing is training glue
    # outside the forward pass and is not implemented as a kernel.
    print("KERNEL_OK")
</pallas_src>

<mosaic_0001>
module attributes {stable_mosaic.version = 11 : i64} {
  func.func @critic_forward_kernel(%arg0: i32, %arg1: memref<128x8xf32, #tpu.memory_space<vmem>>, %arg2: memref<128x4xf32, #tpu.memory_space<vmem>>, %arg3: memref<8x256xf32, #tpu.memory_space<vmem>>, %arg4: memref<4x256xf32, #tpu.memory_space<vmem>>, %arg5: memref<1x256xf32, #tpu.memory_space<vmem>>, %arg6: memref<256x256xbf16, #tpu.memory_space<vmem>>, %arg7: memref<1x256xf32, #tpu.memory_space<vmem>>, %arg8: memref<8x256xbf16, #tpu.memory_space<vmem>>, %arg9: memref<1xf32, #tpu.memory_space<smem>>, %arg10: memref<1x128xf32, #tpu.memory_space<vmem>>) attributes {dimension_semantics = [#tpu.dimension_semantics<parallel>], iteration_bounds = array<i64: 1>, scalar_prefetch = 0 : i64, scratch_operands = 0 : i64, tpu.core_type = #tpu.core_type<tc>, window_params = [{transform_indices = @transform_0, window_bounds = array<i64: 128, 8>}, {transform_indices = @transform_1, window_bounds = array<i64: 128, 4>}, {pipeline_mode = #tpu.pipeline_mode<synchronous>, transform_indices = @transform_2, window_bounds = array<i64: 8, 256>}, {pipeline_mode = #tpu.pipeline_mode<synchronous>, transform_indices = @transform_3, window_bounds = array<i64: 4, 256>}, {pipeline_mode = #tpu.pipeline_mode<synchronous>, transform_indices = @transform_4, window_bounds = array<i64: 1, 256>}, {pipeline_mode = #tpu.pipeline_mode<synchronous>, transform_indices = @transform_5, window_bounds = array<i64: 256, 256>}, {pipeline_mode = #tpu.pipeline_mode<synchronous>, transform_indices = @transform_6, window_bounds = array<i64: 1, 256>}, {pipeline_mode = #tpu.pipeline_mode<synchronous>, transform_indices = @transform_7, window_bounds = array<i64: 8, 256>}, {transform_indices = @transform_8, window_bounds = array<i64: 1>}, {transform_indices = @transform_9, window_bounds = array<i64: 1, 128>}]} {
    %c0 = arith.constant 0 : index
    %c0_0 = arith.constant 0 : index
    %0 = vector.load %arg1[%c0, %c0_0] : memref<128x8xf32, #tpu.memory_space<vmem>>, vector<128x8xf32>
    %c0_1 = arith.constant 0 : index
    %c0_2 = arith.constant 0 : index
    %1 = vector.load %arg3[%c0_1, %c0_2] : memref<8x256xf32, #tpu.memory_space<vmem>>, vector<8x256xf32>
    %cst = arith.constant dense<0.000000e+00> : vector<128x256xf32>
    %2 = tpu.matmul %0, %1, %cst {dimension_numbers = #tpu.dot_dimension_numbers<[1], [0], [0], [1], [0, 0, 1, 1], [], []>} : vector<128x8xf32>, vector<8x256xf32>, vector<128x256xf32> -> vector<128x256xf32>
    %c0_3 = arith.constant 0 : index
    %c0_4 = arith.constant 0 : index
    %3 = vector.load %arg2[%c0_3, %c0_4] : memref<128x4xf32, #tpu.memory_space<vmem>>, vector<128x4xf32>
    %c0_5 = arith.constant 0 : index
    %c0_6 = arith.constant 0 : index
    %4 = vector.load %arg4[%c0_5, %c0_6] : memref<4x256xf32, #tpu.memory_space<vmem>>, vector<4x256xf32>
    %cst_7 = arith.constant dense<0.000000e+00> : vector<128x256xf32>
    %5 = tpu.matmul %3, %4, %cst_7 {dimension_numbers = #tpu.dot_dimension_numbers<[1], [0], [0], [1], [0, 0, 1, 1], [], []>} : vector<128x4xf32>, vector<4x256xf32>, vector<128x256xf32> -> vector<128x256xf32>
    %6 = arith.addf %2, %5 : vector<128x256xf32>
    %c0_8 = arith.constant 0 : index
    %c0_9 = arith.constant 0 : index
    %7 = vector.load %arg5[%c0_8, %c0_9] : memref<1x256xf32, #tpu.memory_space<vmem>>, vector<1x256xf32>
    %8 = vector.broadcast %7 : vector<1x256xf32> to vector<128x256xf32>
    %9 = arith.addf %6, %8 : vector<128x256xf32>
    %cst_10 = arith.constant 0.000000e+00 : f32
    %10 = vector.broadcast %cst_10 : f32 to vector<128x256xf32>
    %11 = arith.maximumf %9, %10 : vector<128x256xf32>
    %12 = arith.truncf %11 : vector<128x256xf32> to vector<128x256xbf16>
    %c0_11 = arith.constant 0 : index
    %c0_12 = arith.constant 0 : index
    %13 = vector.load %arg6[%c0_11, %c0_12] : memref<256x256xbf16, #tpu.memory_space<vmem>>, vector<256x256xbf16>
    %cst_13 = arith.constant dense<0.000000e+00> : vector<128x256xf32>
    %14 = tpu.matmul %12, %13, %cst_13 {dimension_numbers = #tpu.dot_dimension_numbers<[1], [0], [0], [1], [0, 0, 1, 1], [], []>} : vector<128x256xbf16>, vector<256x256xbf16>, vector<128x256xf32> -> vector<128x256xf32>
    %c0_14 = arith.constant 0 : index
    %c0_15 = arith.constant 0 : index
    %15 = vector.load %arg7[%c0_14, %c0_15] : memref<1x256xf32, #tpu.memory_space<vmem>>, vector<1x256xf32>
    %16 = vector.broadcast %15 : vector<1x256xf32> to vector<128x256xf32>
    %17 = arith.addf %14, %16 : vector<128x256xf32>
    %cst_16 = arith.constant 0.000000e+00 : f32
    %18 = vector.broadcast %cst_16 : f32 to vector<128x256xf32>
    %19 = arith.maximumf %17, %18 : vector<128x256xf32>
    %c0_17 = arith.constant 0 : index
    %c0_18 = arith.constant 0 : index
    %20 = vector.load %arg8[%c0_17, %c0_18] : memref<8x256xbf16, #tpu.memory_space<vmem>>, vector<8x256xbf16>
    %21 = arith.truncf %19 : vector<128x256xf32> to vector<128x256xbf16>
    %cst_19 = arith.constant dense<0.000000e+00> : vector<8x128xf32>
    %22 = tpu.matmul %20, %21, %cst_19 {dimension_numbers = #tpu.dot_dimension_numbers<[1], [1], [0], [0], [0, 0, 1, 0], [], []>} : vector<8x256xbf16>, vector<128x256xbf16>, vector<8x128xf32> -> vector<8x128xf32>
    %23 = vector.extract_strided_slice %22 {offsets = [0, 0], sizes = [1, 128], strides = [1, 1]} : vector<8x128xf32> to vector<1x128xf32>
    %c0_20 = arith.constant 0 : index
    %24 = memref.load %arg9[%c0_20] : memref<1xf32, #tpu.memory_space<smem>>
    %25 = vector.broadcast %24 : f32 to vector<1x128xf32>
    %26 = arith.addf %23, %25 : vector<1x128xf32>
    %c0_21 = arith.constant 0 : index
    %c0_22 = arith.constant 0 : index
    %27 = vector.load %arg10[%c0_21, %c0_22] : memref<1x128xf32, #tpu.memory_space<vmem>>, vector<1x128xf32>
    tpu.vector_store %arg10[%c0_21, %c0_22], %26 {strides = array<i32>} : memref<1x128xf32, #tpu.memory_space<vmem>>, vector<1x128xf32>,
    return
  }
  func.func @transform_0(%arg0: i32) -> (i32, i32) {
    %c0_i32 = arith.constant 0 : i32
    %c0_i32_0 = arith.constant 0 : i32
    return %arg0, %c0_i32 : i32, i32
  }
  func.func @transform_1(%arg0: i32) -> (i32, i32) {
    %c0_i32 = arith.constant 0 : i32
    %c0_i32_0 = arith.constant 0 : i32
    return %arg0, %c0_i32 : i32, i32
  }
  func.func @transform_2(%arg0: i32) -> (i32, i32) {
    %c0_i32 = arith.constant 0 : i32
    %c0_i32_0 = arith.constant 0 : i32
    %c0_i32_1 = arith.constant 0 : i32
    return %c0_i32, %c0_i32_0 : i32, i32
  }
  func.func @transform_3(%arg0: i32) -> (i32, i32) {
    %c0_i32 = arith.constant 0 : i32
    %c0_i32_0 = arith.constant 0 : i32
    %c0_i32_1 = arith.constant 0 : i32
    return %c0_i32, %c0_i32_0 : i32, i32
  }
  func.func @transform_4(%arg0: i32) -> (i32, i32) {
    %c0_i32 = arith.constant 0 : i32
    %c0_i32_0 = arith.constant 0 : i32
    %c0_i32_1 = arith.constant 0 : i32
    return %c0_i32, %c0_i32_0 : i32, i32
  }
  func.func @transform_5(%arg0: i32) -> (i32, i32) {
    %c0_i32 = arith.constant 0 : i32
    %c0_i32_0 = arith.constant 0 : i32
    %c0_i32_1 = arith.constant 0 : i32
    return %c0_i32, %c0_i32_0 : i32, i32
  }
  func.func @transform_6(%arg0: i32) -> (i32, i32) {
    %c0_i32 = arith.constant 0 : i32
    %c0_i32_0 = arith.constant 0 : i32
    %c0_i32_1 = arith.constant 0 : i32
    return %c0_i32, %c0_i32_0 : i32, i32
  }
  func.func @transform_7(%arg0: i32) -> (i32, i32) {
    %c0_i32 = arith.constant 0 : i32
    %c0_i32_0 = arith.constant 0 : i32
    %c0_i32_1 = arith.constant 0 : i32
    return %c0_i32, %c0_i32_0 : i32, i32
  }
  func.func @transform_8(%arg0: i32) -> i32 {
    %c0_i32 = arith.constant 0 : i32
    %c0_i32_0 = arith.constant 0 : i32
    return %c0_i32 : i32
  }
  func.func @transform_9(%arg0: i32) -> (i32, i32) {
    %c0_i32 = arith.constant 0 : i32
    %c0_i32_0 = arith.constant 0 : i32
    return %c0_i32, %arg0 : i32, i32
  }
}

</mosaic_0001>

<bundles_post_ra>
// kernel: critic_forward.1
= control target key start
LH: loop header
LB: loop body
LE: loop exit
PB: predicated region body
PF: predicated region fallthrough
CT: control target
= control target key end

     0   :  { %15 = vsyncpa [#allocation4], 0  ;;  %s1718_s0 = inlined_call_operand.vmem [shape: f32[128,8], index: 0, kind: input, shape index: {}]   ;;  %s1719_s1 = inlined_call_operand.vmem [shape: f32[128,4], index: 1, kind: input, shape index: {}]   ;;  %s1720_s2 = inlined_call_operand.vmem [shape: f32[8,256], index: 2, kind: input, shape index: {}]   ;;  %s1721_s3 = inlined_call_operand.hbm [shape: f32[4,256], index: 3, kind: input, shape index: {}]   ;;  %s1722_s4 = inlined_call_operand.hbm [shape: f32[1,256], index: 4, kind: input, shape index: {}]   ;;  %s1723_s5 = inlined_call_operand.vmem [shape: bf16[256,256], index: 5, kind: input, shape index: {}]   ;;  %s1724_s6 = inlined_call_operand.hbm [shape: f32[1,256], index: 6, kind: input, shape index: {}]   ;;  %s1725_s7 = inlined_call_operand.hbm [shape: bf16[8,256], index: 7, kind: input, shape index: {}]   ;;  %s1726_s8 = inlined_call_operand.<no memory space> [shape: f32[1], index: 8, kind: input, shape index: {}]   ;;  %s1727_s9 = inlined_call_operand.vmem [shape: f32[1,128], index: 9, kind: output, shape index: {}]  }
   0x1   :  { %16 = vsyncpa [#allocation6], 0 }
   0x2   :  { %17 = vsyncpa [#allocation9], 0  ;;  %s1269_s30 = smov [#allocation5]   ;;  %s1270_s11 = smov [#allocation3]  }
   0x3   :  { %s40_s10 = sshll.u32 %s1269_s30, 4  ;;  %s30_s12 = sshll.u32 %s1270_s11, 4  ;;  %s41_s10 = int_to_ptr.vmem [resolvable:$true] %s40_s10  ;;  %s31_s12 = int_to_ptr.vmem [resolvable:$true] %s30_s12 }
   0x4   :  { %s1191_s13 = scalar_lea.vmem %s41_s10, 32  ;;  %p1196_p1 = scmp.lt.s32.totalorder %s41_s10, %s41_s10 }
   0x5   :  { %p1192_p0 = scmp.ne.s32.totalorder %s41_s10, %s1191_s13  ;;  %p1197_p2 = scmp.lt.s32.totalorder %s1191_s13, %s1191_s13 }
   0x7   :  { %p1198_p3 = por %p1197_p2, %p1196_p1 }
   0x9   :  { %p1199_p4 = pnand %p1198_p3, %p1192_p0 }
   0xb   :  { %1202 = shalt.err (!%p1199_p4)
}
   0xc   :  { %43 = dma.hbm_to_vmem [thread:$0]  %s1722_s4, 32, %s41_s10, [#allocation6]  }
   0xd   :  { %s1211_s16 = scalar_lea.vmem %s31_s12, 128  ;;  %p1216_p6 = scmp.lt.s32.totalorder %s31_s12, %s31_s12 }
   0xe   :  { %p1212_p5 = scmp.ne.s32.totalorder %s31_s12, %s1211_s16  ;;  %p1217_p7 = scmp.lt.s32.totalorder %s1211_s16, %s1211_s16 }
  0x10   :  { %p1218_p8 = por %p1217_p7, %p1216_p6 }
  0x12   :  { %p1219_p9 = pnand %p1218_p8, %p1212_p5 }
  0x14   :  { %1222 = shalt.err (!%p1219_p9)
}
  0x15   :  { %33 = dma.hbm_to_vmem [thread:$0]  %s1721_s3, 128, %s31_s12, [#allocation4]  }
  0x16   :  { %s1271_s19 = smov [#allocation7]   ;;  %s1272_s21 = smov [#allocation8]  }
  0x17   :  { %s52_s20 = sshll.u32 %s1271_s19, 4  ;;  %s62_s22 = sshll.u32 %s1272_s21, 4  ;;  %s53_s20 = int_to_ptr.vmem [resolvable:$true] %s52_s20  ;;  %s63_s22 = int_to_ptr.vmem [resolvable:$true] %s62_s22 }
  0x18   :  { %s1231_s23 = scalar_lea.vmem %s53_s20, 32  ;;  %p1236_p11 = scmp.lt.s32.totalorder %s53_s20, %s53_s20 }
  0x19   :  { %p1232_p10 = scmp.ne.s32.totalorder %s53_s20, %s1231_s23  ;;  %p1237_p12 = scmp.lt.s32.totalorder %s1231_s23, %s1231_s23 }
  0x1b   :  { %p1238_p13 = por %p1237_p12, %p1236_p11 }
  0x1d   :  { %p1239_p0 = pnand %p1238_p13, %p1232_p10 }
  0x1f   :  { %1242 = shalt.err (!%p1239_p0)
}
  0x20   :  { %55 = dma.hbm_to_vmem [thread:$0]  %s1724_s6, 32, %s53_s20, [#allocation6]  }
  0x21   :  { %s1251_s25 = scalar_lea.vmem %s63_s22, 128  ;;  %p1256_p2 = scmp.lt.s32.totalorder %s63_s22, %s63_s22 }
  0x22   :  { %p1252_p1 = scmp.ne.s32.totalorder %s63_s22, %s1251_s25  ;;  %p1257_p3 = scmp.lt.s32.totalorder %s1251_s25, %s1251_s25 }
  0x24   :  { %p1258_p4 = por %p1257_p3, %p1256_p2 }
  0x26   :  { %p1259_p5 = pnand %p1258_p4, %p1252_p1 }
  0x28   :  { %1262 = shalt.err (!%p1259_p5)
}
  0x29   :  { %65 = dma.hbm_to_vmem [thread:$0]  %s1725_s7, 128, %s63_s22, [#allocation9]  }
  0x2a   :  { %1263 = dma.done.wait [#allocation4], 128  }
  0x2b   :  { %1264 = vsyncadd [#allocation4], 4294967168 }
  0x2c   :  { %1265 = dma.done.wait [#allocation6], 64  }
  0x2d   :  { %1266 = vsyncadd [#allocation6], 4294967232 }
  0x2e   :  { %1267 = dma.done.wait [#allocation9], 128  }
  0x2f   :  { %1268 = vsyncadd [#allocation9], 4294967168  ;;  %v1273_v0 = vmov 0.0   ;;  %v98_v1 = vld [vmem:[%s1720_s2 + $0x8] sm:$0xff]  ;;  %v97_v2 = vld [vmem:[%s1720_s2] sm:$0xff]  ;;  %vm167_vm0 = vcmask 1043456  }
  0x30   :  { %446 = vmatprep.mubr.f32.mxu1 %v1273_v0  ;;  %236 = vmatprep.mubr.f32.mxu0 %v1273_v0  ;;  %v115_v3 = vld [vmem:[#allocation3] sm:$0xff]  ;;  %vm333_vm1 = vcmask 64512   ;;  %vm118_vm2 = vcmask 31744   ;;  %v82_v7 = vld [vmem:[%s1718_s0 + $0x8] sm:$0xff]  ;;  %v83_v9 = vld [vmem:[%s1718_s0 + $0x10] sm:$0xff] }
  0x31   :  { %412 = vmatprep.subr.mxu1 %v98_v1  ;;  %v117_v4 = vcombine.high %v115_v3, %v115_v3  ;;  %v81_v5 = vld [vmem:[%s1718_s0] sm:$0xff]  ;;  %v100_v8 = vld [vmem:[%s1719_s1 + $0x8] sm:$0xff]  ;;  %v101_v10 = vld [vmem:[%s1719_s1 + $0x10] sm:$0xff] }
  0x32   :  { %413 = vmatpush1.msra.mxu1 %v97_v2  ;;  %v99_v6 = vld [vmem:[%s1719_s1] sm:$0xff]  ;;  %v84_v11 = vld [vmem:[%s1718_s0 + $0x18] sm:$0xff]  ;;  %v86_v21 = vld [vmem:[%s1718_s0 + $0x28] sm:$0xff] }
  0x33   :  { %1059 = vmatprep.subr.msk.mxu0 %vm167_vm0, %v117_v4  ;;  %1077 = vmatmul.mubr.msk.f32.vlgmr.msra.gmra.mxu1 %vm333_vm1, %v81_v5  ;;  %v1133_v12 = vld [vmem:[%s1723_s5 + $0x70] ss:$8 sps:$4 sm:$0xff]   ;;  %v1135_v13 = vld [vmem:[%s1723_s5 + $0x74] ss:$8 sps:$4 sm:$0xff]   ;;  %v1138_v15 = vld [vmem:[%s1723_s5 + $0x64] ss:$8 sps:$4 sm:$0xff]   ;;  %v545_v5 = vlaneseq }
  0x34   :  { %1060 = vmatpush1.msk.msra.mxu0 %vm167_vm0, %v115_v3  ;;  %452 = vmatprep.mubr.f32.mxu1 %v1273_v0  ;;  %v102_v14 = vld [vmem:[%s1719_s1 + $0x18] sm:$0xff]  ;;  %v1136_v16 = vld [vmem:[%s1723_s5 + $0x60] ss:$8 sps:$4 sm:$0xff]   ;;  %v1144_v22 = vld [vmem:[%s1723_s5 + $0x44] ss:$8 sps:$4 sm:$0xff]  }
  0x35   :  { %1061 = vmatmul.mubr.msk.f32.vlgmr.msra.gmra.mxu0 %vm118_vm2, %v99_v6  ;;  %839 = vmatprep.subr.bf16.mxu0 %v1135_v13  ;;  %v85_v17 = vld [vmem:[%s1718_s0 + $0x20] sm:$0xff]  ;;  %v1141_v18 = vld [vmem:[%s1723_s5 + $0x54] ss:$8 sps:$4 sm:$0xff]   ;;  %v1139_v20 = vld [vmem:[%s1723_s5 + $0x50] ss:$8 sps:$4 sm:$0xff]   ;;  %v1598_v6 = vshrl.u32 %v545_v5, 7 }
  0x36   :  { %242 = vmatprep.mubr.f32.mxu0 %v1273_v0  ;;  %840 = vmatpush1.bf16.msra.mxu0 %v1133_v12  ;;  %v103_v19 = vld [vmem:[%s1719_s1 + $0x20] sm:$0xff]  ;;  %v104_v23 = vld [vmem:[%s1719_s1 + $0x28] sm:$0xff]  ;;  %v87_v25 = vld [vmem:[%s1718_s0 + $0x30] sm:$0xff] }
  0x37   :  { %1078 = vmatmul.mubr.msk.f32.gmra.mxu1 %vm333_vm1, %v82_v7  ;;  %841 = vmatprep.subr.bf16.mxu0 %v1138_v15  ;;  %v1142_v24 = vld [vmem:[%s1723_s5 + $0x40] ss:$8 sps:$4 sm:$0xff]   ;;  %v1147_v26 = vld [vmem:[%s1723_s5 + $0x34] ss:$8 sps:$4 sm:$0xff]   ;;  %v1145_v29 = vld [vmem:[%s1723_s5 + $0x30] ss:$8 sps:$4 sm:$0xff]  }
  0x38   :  { %458 = vmatprep.mubr.f32.mxu1 %v1273_v0  ;;  %v105_v27 = vld [vmem:[%s1719_s1 + $0x30] sm:$0xff]  ;;  %v88_v28 = vld [vmem:[%s1718_s0 + $0x38] sm:$0xff]  ;;  %v1150_v30 = vld [vmem:[%s1723_s5 + $0x24] ss:$8 sps:$4 sm:$0xff]  }
  0x39   :  { %1062 = vmatmul.mubr.msk.f32.gmra.mxu0 %vm118_vm2, %v100_v8  ;;  %v106_v31 = vld [vmem:[%s1719_s1 + $0x38] sm:$0xff]  ;;  %v1148_v32 = vld [vmem:[%s1723_s5 + $0x20] ss:$8 sps:$4 sm:$0xff]   ;;  %v1156_v38 = vld [vmem:[%s1723_s5 + $0x4] ss:$8 sps:$4 sm:$0xff]   ;;  %v551_v8 = vsub.s32 1, %v1598_v6 }
  0x3a   :  { %248 = vmatprep.mubr.f32.mxu0 %v1273_v0  ;;  %842 = vmatpush1.bf16.msra.mxu0 %v1136_v16  ;;  %v89_v33 = vld [vmem:[%s1718_s0 + $0x40] sm:$0xff]  ;;  %v1153_v34 = vld [vmem:[%s1723_s5 + $0x14] ss:$8 sps:$4 sm:$0xff]   ;;  %v1151_v36 = vld [vmem:[%s1723_s5 + $0x10] ss:$8 sps:$4 sm:$0xff]  }
  0x3b   :  { %1079 = vmatmul.mubr.msk.f32.gmra.mxu1 %vm333_vm1, %v83_v9  ;;  %843 = vmatprep.subr.bf16.mxu0 %v1141_v18  ;;  %v107_v35 = vld [vmem:[%s1719_s1 + $0x40] sm:$0xff]  ;;  %v90_v37 = vld [vmem:[%s1718_s0 + $0x48] sm:$0xff]  ;;  %v91_v41 = vld [vmem:[%s1718_s0 + $0x50] sm:$0xff] }
  0x3c   :  { %464 = vmatprep.mubr.f32.mxu1 %v1273_v0  ;;  %v108_v39 = vld [vmem:[%s1719_s1 + $0x48] sm:$0xff]  ;;  %v1159_v42 = vld [vmem:[%s1723_s5 + $0xf4] ss:$8 sps:$4 sm:$0xff]   ;;  %v1157_v44 = vld [vmem:[%s1723_s5 + $0xf0] ss:$8 sps:$4 sm:$0xff]  }
  0x3d   :  { %1063 = vmatmul.mubr.msk.f32.gmra.mxu0 %vm118_vm2, %v101_v10  ;;  %v1154_v40 = vld [vmem:[%s1723_s5] ss:$8 sps:$4 sm:$0xff]   ;;  %v109_v43 = vld [vmem:[%s1719_s1 + $0x50] sm:$0xff]  ;;  %v92_v45 = vld [vmem:[%s1718_s0 + $0x58] sm:$0xff]  ;;  %v547_v10 = vsub.s32 0, %v1598_v6 }
  0x3e   :  { %254 = vmatprep.mubr.f32.mxu0 %v1273_v0  ;;  %844 = vmatpush1.bf16.msra.mxu0 %v1139_v20  ;;  %v1162_v46 = vld [vmem:[%s1723_s5 + $0xe4] ss:$8 sps:$4 sm:$0xff]   ;;  %v110_v47 = vld [vmem:[%s1719_s1 + $0x58] sm:$0xff]  ;;  %v1160_v48 = vld [vmem:[%s1723_s5 + $0xe0] ss:$8 sps:$4 sm:$0xff]  }
  0x3f   :  { %1080 = vmatmul.mubr.msk.f32.gmra.mxu1 %vm333_vm1, %v84_v11  ;;  %845 = vmatprep.subr.bf16.mxu0 %v1144_v22  ;;  %v93_v49 = vld [vmem:[%s1718_s0 + $0x60] sm:$0xff]  ;;  %v1165_v50 = vld [vmem:[%s1723_s5 + $0xd4] ss:$8 sps:$4 sm:$0xff]   ;;  %v1163_v52 = vld [vmem:[%s1723_s5 + $0xd0] ss:$8 sps:$4 sm:$0xff]  }
  0x40   :  { %470 = vmatprep.mubr.f32.mxu1 %v1273_v0  ;;  %v111_v51 = vld [vmem:[%s1719_s1 + $0x60] sm:$0xff]  ;;  %v94_v53 = vld [vmem:[%s1718_s0 + $0x68] sm:$0xff]  ;;  %v95_v57 = vld [vmem:[%s1718_s0 + $0x70] sm:$0xff] }
  0x41   :  { %1064 = vmatmul.mubr.msk.f32.gmra.mxu0 %vm118_vm2, %v102_v14  ;;  %v1168_v54 = vld [vmem:[%s1723_s5 + $0xc4] ss:$8 sps:$4 sm:$0xff]   ;;  %v1166_v56 = vld [vmem:[%s1723_s5 + $0xc0] ss:$8 sps:$4 sm:$0xff]   ;;  %v113_v58 = vld [vmem:[%s1719_s1 + $0x70] sm:$0xff] }
  0x42   :  { %260 = vmatprep.mubr.f32.mxu0 %v1273_v0  ;;  %846 = vmatpush1.bf16.msra.mxu0 %v1142_v24  ;;  %v112_v55 = vld [vmem:[%s1719_s1 + $0x68] sm:$0xff]  ;;  %v96_v59 = vld [vmem:[%s1718_s0 + $0x78] sm:$0xff] }
  0x43   :  { %1081 = vmatmul.mubr.msk.f32.gmra.mxu1 %vm333_vm1, %v85_v17  ;;  %847 = vmatprep.subr.bf16.mxu0 %v1147_v26  ;;  %v114_v60 = vld [vmem:[%s1719_s1 + $0x78] sm:$0xff]  ;;  %v1174_v63 = vld [vmem:[%s1723_s5 + $0xa4] ss:$8 sps:$4 sm:$0xff]   ;;  %v1178_v4 = vld [vmem:[%s1723_s5 + $0x80] ss:$8 sps:$4 sm:$0xff]  }
  0x44   :  { %476 = vmatprep.mubr.f32.mxu1 %v1273_v0  ;;  %v1171_v61 = vld [vmem:[%s1723_s5 + $0xb4] ss:$8 sps:$4 sm:$0xff]   ;;  %v1169_v62 = vld [vmem:[%s1723_s5 + $0xb0] ss:$8 sps:$4 sm:$0xff]   ;;  %v1180_v3 = vld [vmem:[%s1723_s5 + $0x84] ss:$8 sps:$4 sm:$0xff]  }
  0x45   :  { %1065 = vmatmul.mubr.msk.f32.gmra.mxu0 %vm118_vm2, %v103_v19  ;;  %v1177_v1 = vld [vmem:[%s1723_s5 + $0x94] ss:$8 sps:$4 sm:$0xff]   ;;  %v1175_v2 = vld [vmem:[%s1723_s5 + $0x90] ss:$8 sps:$4 sm:$0xff]   ;;  %v543_v12 = vld [vmem:[#allocation5] sm:$0x3] }
  0x46   :  { %266 = vmatprep.mubr.f32.mxu0 %v1273_v0  ;;  %848 = vmatpush1.bf16.msra.mxu0 %v1145_v29  ;;  %v1604_v16 = vrot.slane %v543_v12, %v551_v8  ;;  %v1608_v18 = vrot.slane %v543_v12, %v547_v10 }
  0x47   :  { %1082 = vmatmul.mubr.msk.f32.gmra.mxu1 %vm333_vm1, %v86_v21  ;;  %849 = vmatprep.subr.bf16.mxu0 %v1150_v30 }
  0x48   :  { %482 = vmatprep.mubr.f32.mxu1 %v1273_v0 }
  0x49   :  { %1066 = vmatmul.mubr.msk.f32.gmra.mxu0 %vm118_vm2, %v104_v23 }
  0x4a   :  { %272 = vmatprep.mubr.f32.mxu0 %v1273_v0  ;;  %850 = vmatpush1.bf16.msra.mxu0 %v1148_v32 }
  0x4b   :  { %1083 = vmatmul.mubr.msk.f32.gmra.mxu1 %vm333_vm1, %v87_v25  ;;  %851 = vmatprep.subr.bf16.mxu0 %v1153_v34 }
  0x4c   :  { %488 = vmatprep.mubr.f32.mxu1 %v1273_v0 }
  0x4d   :  { %1067 = vmatmul.mubr.msk.f32.gmra.mxu0 %vm118_vm2, %v105_v27 }
  0x4e   :  { %278 = vmatprep.mubr.f32.mxu0 %v1273_v0  ;;  %852 = vmatpush1.bf16.msra.mxu0 %v1151_v36 }
  0x4f   :  { %1084 = vmatmul.mubr.msk.f32.gmra.mxu1 %vm333_vm1, %v88_v28  ;;  %853 = vmatprep.subr.bf16.mxu0 %v1156_v38 }
  0x50   :  { %494 = vmatprep.mubr.f32.mxu1 %v1273_v0 }
  0x51   :  { %1068 = vmatmul.mubr.msk.f32.gmra.mxu0 %vm118_vm2, %v106_v31 }
  0x52   :  { %284 = vmatprep.mubr.f32.mxu0 %v1273_v0  ;;  %854 = vmatpush1.bf16.msra.mxu0 %v1154_v40 }
  0x53   :  { %1085 = vmatmul.mubr.msk.f32.gmra.mxu1 %vm333_vm1, %v89_v33  ;;  %855 = vmatprep.subr.bf16.mxu0 %v1159_v42 }
  0x54   :  { %500 = vmatprep.mubr.f32.mxu1 %v1273_v0 }
  0x55   :  { %1069 = vmatmul.mubr.msk.f32.gmra.mxu0 %vm118_vm2, %v107_v35 }
  0x56   :  { %290 = vmatprep.mubr.f32.mxu0 %v1273_v0  ;;  %856 = vmatpush2.bf16.msra.mxu0 %v1157_v44 }
  0x57   :  { %1086 = vmatmul.mubr.msk.f32.gmra.mxu1 %vm333_vm1, %v90_v37  ;;  %857 = vmatprep.subr.bf16.mxu0 %v1162_v46 }
  0x58   :  { %506 = vmatprep.mubr.f32.mxu1 %v1273_v0 }
  0x59   :  { %1070 = vmatmul.mubr.msk.f32.gmra.mxu0 %vm118_vm2, %v108_v39 }
  0x5a   :  { %296 = vmatprep.mubr.f32.mxu0 %v1273_v0  ;;  %858 = vmatpush2.bf16.msra.mxu0 %v1160_v48 }
  0x5b   :  { %1087 = vmatmul.mubr.msk.f32.gmra.mxu1 %vm333_vm1, %v91_v41  ;;  %859 = vmatprep.subr.bf16.mxu0 %v1165_v50 }
  0x5c   :  { %512 = vmatprep.mubr.f32.mxu1 %v1273_v0 }
  0x5d   :  { %1071 = vmatmul.mubr.msk.f32.gmra.mxu0 %vm118_vm2, %v109_v43 }
  0x5e   :  { %302 = vmatprep.mubr.f32.mxu0 %v1273_v0  ;;  %860 = vmatpush2.bf16.msra.mxu0 %v1163_v52 }
  0x5f   :  { %1088 = vmatmul.mubr.msk.f32.gmra.mxu1 %vm333_vm1, %v92_v45  ;;  %861 = vmatprep.subr.bf16.mxu0 %v1168_v54 }
  0x60   :  { %518 = vmatprep.mubr.f32.mxu1 %v1273_v0 }
  0x61   :  { %1072 = vmatmul.mubr.msk.f32.gmra.mxu0 %vm118_vm2, %v110_v47 }
  0x62   :  { %308 = vmatprep.mubr.f32.mxu0 %v1273_v0  ;;  %862 = vmatpush2.bf16.msra.mxu0 %v1166_v56 }
  0x63   :  { %1089 = vmatmul.mubr.msk.f32.gmra.mxu1 %vm333_vm1, %v93_v49  ;;  %863 = vmatprep.subr.bf16.mxu0 %v1171_v61 }
  0x64   :  { %524 = vmatprep.mubr.f32.mxu1 %v1273_v0 }
  0x65   :  { %1073 = vmatmul.mubr.msk.f32.gmra.mxu0 %vm118_vm2, %v111_v51 }
  0x66   :  { %314 = vmatprep.mubr.f32.mxu0 %v1273_v0  ;;  %864 = vmatpush2.bf16.msra.mxu0 %v1169_v62 }
  0x67   :  { %1090 = vmatmul.mubr.msk.f32.gmra.mxu1 %vm333_vm1, %v94_v53  ;;  %865 = vmatprep.subr.bf16.mxu0 %v1174_v63 }
  0x68   :  { %530 = vmatprep.mubr.f32.mxu1 %v1273_v0 }
  0x69   :  { %1074 = vmatmul.mubr.msk.f32.gmra.mxu0 %vm118_vm2, %v112_v55 }
  0x6a   :  { %320 = vmatprep.mubr.f32.mxu0 %v1273_v0 }
  0x6b   :  { %1091 = vmatmul.mubr.msk.f32.gmra.mxu1 %vm333_vm1, %v95_v57 }
  0x6c   :  { %536 = vmatprep.mubr.f32.mxu1 %v1273_v0 }
  0x6d   :  { %1075 = vmatmul.mubr.msk.f32.gmra.mxu0 %vm118_vm2, %v113_v58 }
  0x6e   :  { %326 = vmatprep.mubr.f32.mxu0 %v1273_v0  ;;  %v1172_v0 = vld [vmem:[%s1723_s5 + $0xa0] ss:$8 sps:$4 sm:$0xff]  }
  0x6f   :  { %1092 = vmatmul.mubr.msk.f32.gmra.mxu1 %vm333_vm1, %v96_v59  ;;  %866 = vmatpush2.bf16.msra.mxu0 %v1172_v0 }
  0x70   :  { %867 = vmatprep.subr.bf16.mxu0 %v1177_v1 }
  0x71   :  { %1076 = vmatmul.mubr.msk.f32.gmra.mxu0 %vm118_vm2, %v114_v60 }
  0x73   :  { %868 = vmatpush2.bf16.msra.mxu0 %v1175_v2 }
  0x74   :  { %869 = vmatprep.subr.bf16.mxu0 %v1180_v3 }
  0x77   :  { %870 = vmatpush2.bf16.msra.mxu0 %v1178_v4 }
  0xf3   :  { %v448_v7 = vpop.f32.mrf.mxu1 }
  0xf5   :  { %v238_v9 = vpop.f32.mrf.mxu0  ;;  %v450_v11 = vpop.f32.mrf.mxu1 }
  0xf6   :  { %v449_v17 = vadd.f32 %v448_v7, %v238_v9 }
  0xf7   :  { %v240_v13 = vpop.f32.mrf.mxu0  ;;  %v454_v14 = vpop.f32.mrf.mxu1 }
  0xf8   :  { %v451_v15 = vadd.f32 %v450_v11, %v240_v13  ;;  %v555_v27 = vadd.f32 %v1608_v18, %v449_v17 }
  0xf9   :  { %v244_v19 = vpop.f32.mrf.mxu0  ;;  %v456_v20 = vpop.f32.mrf.mxu1 }
  0xfa   :  { %v455_v21 = vadd.f32 %v454_v14, %v244_v19  ;;  %v556_v24 = vadd.f32 %v1604_v16, %v451_v15  ;;  %v587_v37 = vmax.f32 %v555_v27, 0.0 }
  0xfb   :  { %v246_v22 = vpop.f32.mrf.mxu0  ;;  %v460_v23 = vpop.f32.mrf.mxu1 }
  0xfc   :  { %v557_v25 = vadd.f32 %v1608_v18, %v455_v21  ;;  %v457_v26 = vadd.f32 %v456_v20, %v246_v22  ;;  %v588_v34 = vmax.f32 %v556_v24, 0.0 }
  0xfd   :  { %v250_v28 = vpop.f32.mrf.mxu0  ;;  %v462_v29 = vpop.f32.mrf.mxu1 }
  0xfe   :  { %v558_v30 = vadd.f32 %v1604_v16, %v457_v26  ;;  %v589_v31 = vmax.f32 %v557_v25, 0.0  ;;  %v461_v38 = vadd.f32 %v460_v23, %v250_v28 }
  0xff   :  { %v252_v32 = vpop.f32.mrf.mxu0  ;;  %v466_v33 = vpop.f32.mrf.mxu1 }
 0x100   :  { %v590_v35 = vmax.f32 %v558_v30, 0.0  ;;  %v463_v36 = vadd.f32 %v462_v29, %v252_v32  ;;  %v619_v43 = vpack.c.bf16 %v589_v31, %v587_v37  ;;  %v559_v49 = vadd.f32 %v1608_v18, %v461_v38 }
 0x101   :  { %v256_v39 = vpop.f32.mrf.mxu0  ;;  %v468_v40 = vpop.f32.mrf.mxu1 }
 0x102   :  { %v467_v41 = vadd.f32 %v466_v33, %v256_v39  ;;  %v620_v42 = vpack.c.bf16 %v590_v35, %v588_v34  ;;  %v560_v46 = vadd.f32 %v1604_v16, %v463_v36  ;;  %v591_v59 = vmax.f32 %v559_v49, 0.0 }
 0x103   :  { %v258_v44 = vpop.f32.mrf.mxu0  ;;  %v472_v45 = vpop.f32.mrf.mxu1 }
 0x104   :  { %v561_v47 = vadd.f32 %v1608_v18, %v467_v41  ;;  %v469_v48 = vadd.f32 %v468_v40, %v258_v44  ;;  %871 = vmatprep.mubr.bf16.mxu0 %v620_v42  ;;  %v592_v56 = vmax.f32 %v560_v46, 0.0 }
 0x105   :  { %v262_v50 = vpop.f32.mrf.mxu0  ;;  %v474_v51 = vpop.f32.mrf.mxu1  ;;  %872 = vmatmul.mubr.bf16.vlgmr.msra.gmra.mxu0 %v619_v43 }
 0x106   :  { %v562_v52 = vadd.f32 %v1604_v16, %v469_v48  ;;  %v593_v53 = vmax.f32 %v561_v47, 0.0  ;;  %v473_v60 = vadd.f32 %v472_v45, %v262_v50 }
 0x107   :  { %v264_v54 = vpop.f32.mrf.mxu0  ;;  %v478_v55 = vpop.f32.mrf.mxu1 }
 0x108   :  { %v594_v57 = vmax.f32 %v562_v52, 0.0  ;;  %v475_v58 = vadd.f32 %v474_v51, %v264_v54  ;;  %v621_v3 = vpack.c.bf16 %v593_v53, %v591_v59  ;;  %v563_v9 = vadd.f32 %v1608_v18, %v473_v60 }
 0x109   :  { %v268_v61 = vpop.f32.mrf.mxu0  ;;  %v480_v62 = vpop.f32.mrf.mxu1 }
 0x10a   :  { %v479_v63 = vadd.f32 %v478_v55, %v268_v61  ;;  %v622_v0 = vpack.c.bf16 %v594_v57, %v592_v56  ;;  %v564_v4 = vadd.f32 %v1604_v16, %v475_v58  ;;  %v595_v22 = vmax.f32 %v563_v9, 0.0 }
 0x10b   :  { %v270_v1 = vpop.f32.mrf.mxu0  ;;  %v484_v2 = vpop.f32.mrf.mxu1 }
 0x10c   :  { %v565_v5 = vadd.f32 %v1608_v18, %v479_v63  ;;  %v481_v7 = vadd.f32 %v480_v62, %v270_v1  ;;  %881 = vmatprep.mubr.bf16.mxu0 %v622_v0  ;;  %v596_v19 = vmax.f32 %v564_v4, 0.0 }
 0x10d   :  { %v274_v11 = vpop.f32.mrf.mxu0  ;;  %v486_v12 = vpop.f32.mrf.mxu1  ;;  %882 = vmatmul.mubr.bf16.gmra.mxu0 %v621_v3 }
 0x10e   :  { %v566_v13 = vadd.f32 %v1604_v16, %v481_v7  ;;  %v597_v14 = vmax.f32 %v565_v5, 0.0  ;;  %v485_v23 = vadd.f32 %v484_v2, %v274_v11 }
 0x10f   :  { %v276_v15 = vpop.f32.mrf.mxu0  ;;  %v490_v17 = vpop.f32.mrf.mxu1 }
 0x110   :  { %v598_v20 = vmax.f32 %v566_v13, 0.0  ;;  %v487_v21 = vadd.f32 %v486_v12, %v276_v15  ;;  %v623_v30 = vpack.c.bf16 %v597_v14, %v595_v22  ;;  %v567_v34 = vadd.f32 %v1608_v18, %v485_v23 }
 0x111   :  { %v280_v24 = vpop.f32.mrf.mxu0  ;;  %v492_v25 = vpop.f32.mrf.mxu1 }
 0x112   :  { %v491_v26 = vadd.f32 %v490_v17, %v280_v24  ;;  %v624_v27 = vpack.c.bf16 %v598_v20, %v596_v19  ;;  %v568_v31 = vadd.f32 %v1604_v16, %v487_v21  ;;  %v599_v44 = vmax.f32 %v567_v34, 0.0 }
 0x113   :  { %v282_v28 = vpop.f32.mrf.mxu0  ;;  %v496_v29 = vpop.f32.mrf.mxu1 }
 0x114   :  { %v569_v32 = vadd.f32 %v1608_v18, %v491_v26  ;;  %v493_v33 = vadd.f32 %v492_v25, %v282_v28  ;;  %891 = vmatprep.mubr.bf16.mxu0 %v624_v27  ;;  %v600_v41 = vmax.f32 %v568_v31, 0.0 }
 0x115   :  { %v286_v35 = vpop.f32.mrf.mxu0  ;;  %v498_v36 = vpop.f32.mrf.mxu1  ;;  %892 = vmatmul.mubr.bf16.gmra.mxu0 %v623_v30 }
 0x116   :  { %v570_v37 = vadd.f32 %v1604_v16, %v493_v33  ;;  %v601_v38 = vmax.f32 %v569_v32, 0.0  ;;  %v497_v45 = vadd.f32 %v496_v29, %v286_v35 }
 0x117   :  { %v288_v39 = vpop.f32.mrf.mxu0  ;;  %v502_v40 = vpop.f32.mrf.mxu1 }
 0x118   :  { %v602_v42 = vmax.f32 %v570_v37, 0.0  ;;  %v499_v43 = vadd.f32 %v498_v36, %v288_v39  ;;  %v625_v52 = vpack.c.bf16 %v601_v38, %v599_v44  ;;  %v571_v56 = vadd.f32 %v1608_v18, %v497_v45 }
 0x119   :  { %v292_v46 = vpop.f32.mrf.mxu0  ;;  %v504_v47 = vpop.f32.mrf.mxu1 }
 0x11a   :  { %v503_v48 = vadd.f32 %v502_v40, %v292_v46  ;;  %v626_v49 = vpack.c.bf16 %v602_v42, %v600_v41  ;;  %v572_v53 = vadd.f32 %v1604_v16, %v499_v43  ;;  %v603_v2 = vmax.f32 %v571_v56, 0.0 }
 0x11b   :  { %v294_v50 = vpop.f32.mrf.mxu0  ;;  %v508_v51 = vpop.f32.mrf.mxu1 }
 0x11c   :  { %v573_v54 = vadd.f32 %v1608_v18, %v503_v48  ;;  %v505_v55 = vadd.f32 %v504_v47, %v294_v50  ;;  %901 = vmatprep.mubr.bf16.mxu0 %v626_v49  ;;  %v604_v63 = vmax.f32 %v572_v53, 0.0 }
 0x11d   :  { %v298_v57 = vpop.f32.mrf.mxu0  ;;  %v510_v58 = vpop.f32.mrf.mxu1  ;;  %902 = vmatmul.mubr.bf16.gmra.mxu0 %v625_v52 }
 0x11e   :  { %v574_v59 = vadd.f32 %v1604_v16, %v505_v55  ;;  %v605_v60 = vmax.f32 %v573_v54, 0.0  ;;  %v509_v3 = vadd.f32 %v508_v51, %v298_v57 }
 0x11f   :  { %v300_v61 = vpop.f32.mrf.mxu0  ;;  %v514_v62 = vpop.f32.mrf.mxu1 }
 0x120   :  { %v606_v0 = vmax.f32 %v574_v59, 0.0  ;;  %v511_v1 = vadd.f32 %v510_v58, %v300_v61  ;;  %v627_v13 = vpack.c.bf16 %v605_v60, %v603_v2  ;;  %v575_v19 = vadd.f32 %v1608_v18, %v509_v3 }
 0x121   :  { %v304_v4 = vpop.f32.mrf.mxu0  ;;  %v516_v5 = vpop.f32.mrf.mxu1 }
 0x122   :  { %v515_v7 = vadd.f32 %v514_v62, %v304_v4  ;;  %v628_v9 = vpack.c.bf16 %v606_v0, %v604_v63  ;;  %v576_v14 = vadd.f32 %v1604_v16, %v511_v1  ;;  %v607_v29 = vmax.f32 %v575_v19, 0.0 }
 0x123   :  { %v306_v11 = vpop.f32.mrf.mxu0  ;;  %v520_v12 = vpop.f32.mrf.mxu1 }
 0x124   :  { %v577_v15 = vadd.f32 %v1608_v18, %v515_v7  ;;  %v517_v17 = vadd.f32 %v516_v5, %v306_v11  ;;  %911 = vmatprep.mubr.bf16.mxu0 %v628_v9  ;;  %v608_v26 = vmax.f32 %v576_v14, 0.0  ;;  %v667_v7 = vld [vmem:[#allocation7] sm:$0x3]  ;;  %v1642_v9 = vld [vmem:[#allocation8] sm:$0xff] }
 0x125   :  { %v310_v20 = vpop.f32.mrf.mxu0  ;;  %v522_v21 = vpop.f32.mrf.mxu1  ;;  %912 = vmatmul.mubr.bf16.gmra.mxu0 %v627_v13  ;;  %v1646_v11 = vrot.slane %v667_v7, %v547_v10 }
 0x126   :  { %v578_v22 = vadd.f32 %v1604_v16, %v517_v17  ;;  %v609_v23 = vmax.f32 %v577_v15, 0.0  ;;  %v521_v30 = vadd.f32 %v520_v12, %v310_v20 }
 0x127   :  { %v312_v24 = vpop.f32.mrf.mxu0  ;;  %v526_v25 = vpop.f32.mrf.mxu1 }
 0x128   :  { %v610_v27 = vmax.f32 %v578_v22, 0.0  ;;  %v523_v28 = vadd.f32 %v522_v21, %v312_v24  ;;  %v629_v37 = vpack.c.bf16 %v609_v23, %v607_v29  ;;  %v579_v41 = vadd.f32 %v1608_v18, %v521_v30 }
 0x129   :  { %v316_v31 = vpop.f32.mrf.mxu0  ;;  %v528_v32 = vpop.f32.mrf.mxu1 }
 0x12a   :  { %v527_v33 = vadd.f32 %v526_v25, %v316_v31  ;;  %v630_v34 = vpack.c.bf16 %v610_v27, %v608_v26  ;;  %v580_v38 = vadd.f32 %v1604_v16, %v523_v28  ;;  %v611_v51 = vmax.f32 %v579_v41, 0.0 }
 0x12b   :  { %v318_v35 = vpop.f32.mrf.mxu0  ;;  %v532_v36 = vpop.f32.mrf.mxu1 }
 0x12c   :  { %v581_v39 = vadd.f32 %v1608_v18, %v527_v33  ;;  %v529_v40 = vadd.f32 %v528_v32, %v318_v35  ;;  %921 = vmatprep.mubr.bf16.mxu0 %v630_v34  ;;  %v612_v48 = vmax.f32 %v580_v38, 0.0 }
 0x12d   :  { %v322_v42 = vpop.f32.mrf.mxu0  ;;  %v534_v43 = vpop.f32.mrf.mxu1  ;;  %922 = vmatmul.mubr.bf16.gmra.mxu0 %v629_v37 }
 0x12e   :  { %v582_v44 = vadd.f32 %v1604_v16, %v529_v40  ;;  %v613_v45 = vmax.f32 %v581_v39, 0.0  ;;  %v533_v52 = vadd.f32 %v532_v36, %v322_v42 }
 0x12f   :  { %v324_v46 = vpop.f32.mrf.mxu0  ;;  %v538_v47 = vpop.f32.mrf.mxu1 }
 0x130   :  { %v614_v49 = vmax.f32 %v582_v44, 0.0  ;;  %v535_v50 = vadd.f32 %v534_v43, %v324_v46  ;;  %v631_v58 = vpack.c.bf16 %v613_v45, %v611_v51  ;;  %v583_v62 = vadd.f32 %v1608_v18, %v533_v52 }
 0x131   :  { %v328_v53 = vpop.f32.mrf.mxu0  ;;  %v540_v56 = vpop.f32.mrf.mxu1 }
 0x132   :  { %v539_v54 = vadd.f32 %v538_v47, %v328_v53  ;;  %v632_v55 = vpack.c.bf16 %v614_v49, %v612_v48  ;;  %v584_v59 = vadd.f32 %v1604_v16, %v535_v50  ;;  %v615_v3 = vmax.f32 %v583_v62, 0.0 }
 0x133   :  { %v330_v57 = vpop.f32.mrf.mxu0 }
 0x134   :  { %v585_v60 = vadd.f32 %v1608_v18, %v539_v54  ;;  %v541_v61 = vadd.f32 %v540_v56, %v330_v57  ;;  %931 = vmatprep.mubr.bf16.mxu0 %v632_v55  ;;  %v616_v1 = vmax.f32 %v584_v59, 0.0  ;;  %v1126_v18 = vcombine.high %v1642_v9, %v1642_v9 }
 0x135   :  { %932 = vmatmul.mubr.bf16.gmra.mxu0 %v631_v58 }
 0x136   :  { %v586_v63 = vadd.f32 %v1604_v16, %v541_v61  ;;  %v617_v0 = vmax.f32 %v585_v60, 0.0  ;;  %v1652_v16 = vrot.slane %v667_v7, %v551_v8  ;;  %1040 = vmatprep.mubr.bf16.mxu1 %v1126_v18 }
 0x138   :  { %v618_v2 = vmax.f32 %v586_v63, 0.0  ;;  %v633_v5 = vpack.c.bf16 %v617_v0, %v615_v3 }
 0x13a   :  { %v634_v4 = vpack.c.bf16 %v618_v2, %v616_v1 }
 0x13c   :  { %941 = vmatprep.mubr.bf16.mxu0 %v634_v4 }
 0x13d   :  { %942 = vmatmul.mubr.bf16.gmra.mxu0 %v633_v5 }
 0x1c5   :  { %v873_v12 = vpop.f32.mrf.mxu0 }
 0x1c6   :  { %v874_v14 = vadd.f32 %v873_v12, %v1646_v11 }
 0x1c7   :  { %v875_v13 = vpop.f32.mrf.mxu0 }
 0x1c8   :  { %v876_v17 = vadd.f32 %v875_v13, %v1652_v16  ;;  %v952_v10 = vmax.f32 %v874_v14, 0.0 }
 0x1c9   :  { %v877_v15 = vpop.f32.mrf.mxu0 }
 0x1ca   :  { %v878_v19 = vadd.f32 %v877_v15, %v1646_v11  ;;  %v953_v24 = vmax.f32 %v876_v17, 0.0 }
 0x1cb   :  { %v879_v20 = vpop.f32.mrf.mxu0 }
 0x1cc   :  { %v954_v21 = vmax.f32 %v878_v19, 0.0  ;;  %v880_v22 = vadd.f32 %v879_v20, %v1652_v16 }
 0x1cd   :  { %v883_v23 = vpop.f32.mrf.mxu0 }
 0x1ce   :  { %v1658_v25 = vpack.c.bf16 %v954_v21, %v952_v10  ;;  %v955_v6 = vmax.f32 %v880_v22, 0.0  ;;  %v884_v27 = vadd.f32 %v883_v23, %v1646_v11 }
 0x1cf   :  { %v885_v8 = vpop.f32.mrf.mxu0 }
 0x1d0   :  { %v1660_v26 = vpack.c.bf16 %v955_v6, %v953_v24  ;;  %v886_v29 = vadd.f32 %v885_v8, %v1652_v16  ;;  %v956_v32 = vmax.f32 %v884_v27, 0.0 }
 0x1d1   :  { %v887_v28 = vpop.f32.mrf.mxu0 }
 0x1d2   :  { %v888_v30 = vadd.f32 %v887_v28, %v1646_v11  ;;  %v957_v36 = vmax.f32 %v886_v29, 0.0 }
 0x1d3   :  { %v889_v31 = vpop.f32.mrf.mxu0 }
 0x1d4   :  { %v958_v33 = vmax.f32 %v888_v30, 0.0  ;;  %v890_v34 = vadd.f32 %v889_v31, %v1652_v16 }
 0x1d5   :  { %v893_v35 = vpop.f32.mrf.mxu0 }
 0x1d6   :  { %v1666_v37 = vpack.c.bf16 %v958_v33, %v956_v32  ;;  %v959_v38 = vmax.f32 %v890_v34, 0.0  ;;  %v894_v41 = vadd.f32 %v893_v35, %v1646_v11 }
 0x1d7   :  { %v895_v39 = vpop.f32.mrf.mxu0 }
 0x1d8   :  { %v1668_v40 = vpack.c.bf16 %v959_v38, %v957_v36  ;;  %v896_v43 = vadd.f32 %v895_v39, %v1652_v16  ;;  %v960_v46 = vmax.f32 %v894_v41, 0.0 }
 0x1d9   :  { %v897_v42 = vpop.f32.mrf.mxu0 }
 0x1da   :  { %v898_v44 = vadd.f32 %v897_v42, %v1646_v11  ;;  %v961_v50 = vmax.f32 %v896_v43, 0.0 }
 0x1db   :  { %v899_v45 = vpop.f32.mrf.mxu0 }
 0x1dc   :  { %v962_v47 = vmax.f32 %v898_v44, 0.0  ;;  %v900_v48 = vadd.f32 %v899_v45, %v1652_v16 }
 0x1dd   :  { %v903_v49 = vpop.f32.mrf.mxu0 }
 0x1de   :  { %v1674_v51 = vpack.c.bf16 %v962_v47, %v960_v46  ;;  %v963_v52 = vmax.f32 %v900_v48, 0.0  ;;  %v904_v55 = vadd.f32 %v903_v49, %v1646_v11 }
 0x1df   :  { %v1676_v53 = vpop.f32.mrf.mxu0 }
 0x1e0   :  { %v1678_v54 = vpack.c.bf16 %v963_v52, %v961_v50  ;;  %v964_v59 = vmax.f32 %v904_v55, 0.0 }
 0x1e1   :  { %v907_v56 = vpop.f32.mrf.mxu0 }
 0x1e2   :  { %v908_v57 = vadd.f32 %v907_v56, %v1646_v11 }
 0x1e3   :  { %v909_v58 = vpop.f32.mrf.mxu0 }
 0x1e4   :  { %v966_v60 = vmax.f32 %v908_v57, 0.0 }
 0x1e5   :  { %v913_v61 = vpop.f32.mrf.mxu0 }
 0x1e6   :  { %v1682_v62 = vpack.c.bf16 %v966_v60, %v964_v59  ;;  %v910_v60 = vadd.f32 %v909_v58, %v1652_v16 }
 0x1e7   :  { %v915_v63 = vpop.f32.mrf.mxu0 }
 0x1e8   :  { %v916_v49 = vadd.f32 %v915_v63, %v1652_v16  ;;  %v967_v63 = vmax.f32 %v910_v60, 0.0 }
 0x1e9   :  { %v917_v0 = vpop.f32.mrf.mxu0 }
 0x1ea   :  { %v969_v56 = vmax.f32 %v916_v49, 0.0  ;;  %v918_v57 = vadd.f32 %v917_v0, %v1646_v11 }
 0x1eb   :  { %v919_v1 = vpop.f32.mrf.mxu0 }
 0x1ec   :  { %v920_v46 = vadd.f32 %v919_v1, %v1652_v16  ;;  %v906_v1 = vadd.f32 %v1676_v53, %v1652_v16 }
 0x1ed   :  { %v923_v2 = vpop.f32.mrf.mxu0 }
 0x1ee   :  { %v924_v48 = vadd.f32 %v923_v2, %v1646_v11  ;;  %v971_v52 = vmax.f32 %v920_v46, 0.0  ;;  %v970_v2 = vmax.f32 %v918_v57, 0.0 }
 0x1ef   :  { %v925_v3 = vpop.f32.mrf.mxu0 }
 0x1f0   :  { %v926_v38 = vadd.f32 %v925_v3, %v1652_v16  ;;  %v972_v55 = vmax.f32 %v924_v48, 0.0  ;;  %v994_v3 = vpack.c.bf16 %v971_v52, %v969_v56 }
 0x1f1   :  { %v927_v4 = vpop.f32.mrf.mxu0 }
 0x1f2   :  { %v973_v43 = vmax.f32 %v926_v38, 0.0  ;;  %v928_v44 = vadd.f32 %v927_v4, %v1646_v11  ;;  %v914_v4 = vadd.f32 %v913_v61, %v1646_v11 }
 0x1f3   :  { %v929_v5 = vpop.f32.mrf.mxu0 }
 0x1f4   :  { %v930_v34 = vadd.f32 %v929_v5, %v1652_v16  ;;  %v974_v50 = vmax.f32 %v928_v44, 0.0  ;;  %v968_v5 = vmax.f32 %v914_v4, 0.0 }
 0x1f5   :  { %v933_v7 = vpop.f32.mrf.mxu0 }
 0x1f6   :  { %v934_v36 = vadd.f32 %v933_v7, %v1646_v11  ;;  %v975_v41 = vmax.f32 %v930_v34, 0.0  ;;  %v995_v59 = vpack.c.bf16 %v974_v50, %v972_v55  ;;  %v965_v7 = vmax.f32 %v906_v1, 0.0 }
 0x1f7   :  { %v935_v18 = vpop.f32.mrf.mxu0 }
 0x1f8   :  { %v936_v23 = vadd.f32 %v935_v18, %v1652_v16  ;;  %v976_v42 = vmax.f32 %v934_v36, 0.0  ;;  %v996_v47 = vpack.c.bf16 %v975_v41, %v973_v43  ;;  %v993_v18 = vpack.c.bf16 %v970_v2, %v968_v5 }
 0x1f9   :  { %v937_v12 = vpop.f32.mrf.mxu0 }
 0x1fa   :  { %v977_v30 = vmax.f32 %v936_v23, 0.0  ;;  %v938_v32 = vadd.f32 %v937_v12, %v1646_v11  ;;  %v992_v12 = vpack.c.bf16 %v967_v63, %v965_v7 }
 0x1fb   :  { %v939_v13 = vpop.f32.mrf.mxu0 }
 0x1fc   :  { %v940_v19 = vadd.f32 %v939_v13, %v1652_v16  ;;  %v978_v39 = vmax.f32 %v938_v32, 0.0 }
 0x1fd   :  { %v943_v14 = vpop.f32.mrf.mxu0 }
 0x1fe   :  { %v944_v21 = vadd.f32 %v943_v14, %v1646_v11  ;;  %v979_v8 = vmax.f32 %v940_v19, 0.0  ;;  %v997_v45 = vpack.c.bf16 %v978_v39, %v976_v42 }
 0x1ff   :  { %v945_v15 = vpop.f32.mrf.mxu0 }
 0x200   :  { %v946_v20 = vadd.f32 %v945_v15, %v1652_v16  ;;  %v980_v29 = vmax.f32 %v944_v21, 0.0  ;;  %v998_v35 = vpack.c.bf16 %v979_v8, %v977_v30 }
 0x201   :  { %v947_v17 = vpop.f32.mrf.mxu0 }
 0x202   :  { %v948_v10 = vadd.f32 %v947_v17, %v1646_v11  ;;  %v981_v27 = vmax.f32 %v946_v20, 0.0  ;;  %v1125_v11 = vcombine.low %v1642_v9, %v1642_v9 }
 0x203   :  { %v949_v22 = vpop.f32.mrf.mxu0 }
 0x204   :  { %v950_v24 = vadd.f32 %v949_v22, %v1652_v16  ;;  %v982_v6 = vmax.f32 %v948_v10, 0.0  ;;  %v1049_v16 = vstv %s1726_s8 }
 0x206   :  { %v983_v28 = vmax.f32 %v950_v24, 0.0  ;;  %v999_v33 = vpack.c.bf16 %v982_v6, %v980_v29 }
 0x208   :  { %v1000_v31 = vpack.c.bf16 %v983_v28, %v981_v27 }
 0x20a   :  { %1008 = vmatprep.subr.bf16.mxu1 %v1000_v31 }
 0x20b   :  { %1009 = vmatpush1.bf16.xpose.msra.mxu1 %v999_v33 }
 0x20c   :  { %1010 = vmatprep.subr.bf16.mxu1 %v998_v35 }
 0x213   :  { %1011 = vmatpush1.bf16.xpose.msra.mxu1 %v997_v45 }
 0x214   :  { %1012 = vmatprep.subr.bf16.mxu1 %v996_v47 }
 0x21b   :  { %1013 = vmatpush1.bf16.xpose.msra.mxu1 %v995_v59 }
 0x21c   :  { %1014 = vmatprep.subr.bf16.mxu1 %v994_v3 }
 0x223   :  { %1015 = vmatpush1.bf16.xpose.msra.mxu1 %v993_v18 }
 0x224   :  { %1016 = vmatprep.subr.bf16.mxu1 %v992_v12 }
 0x22b   :  { %1017 = vmatpush1.bf16.xpose.msra.mxu1 %v1682_v62 }
 0x22c   :  { %1018 = vmatprep.subr.bf16.mxu1 %v1678_v54 }
 0x233   :  { %1019 = vmatpush1.bf16.xpose.msra.mxu1 %v1674_v51 }
 0x234   :  { %1020 = vmatprep.subr.bf16.mxu1 %v1668_v40 }
 0x23b   :  { %1021 = vmatpush1.bf16.xpose.msra.mxu1 %v1666_v37 }
 0x23c   :  { %1022 = vmatprep.subr.bf16.mxu1 %v1660_v26 }
 0x243   :  { %1023 = vmatpush1.bf16.xpose.msra.mxu1 %v1658_v25 }
 0x24a   :  { %1041 = vmatmul.mubr.bf16.vlgmr.msra.gmra.mxu1 %v1125_v11 }
 0x30a   :  { %v1042_v53 = vpop.f32.mrf.mxu1 }
 0x30b   :  { %v1050_v54 = vadd.f32 %v1049_v16, %v1042_v53 }
 0x30c   :  { %v1044_v58 = vpop.f32.mrf.mxu1 }
 0x30d   :  { %1051 = vst [vmem:[%s1727_s9] sm:$0x1] %v1050_v54 }
 0x30e   :  { %v1045_v37 = vpop.f32.mrf.mxu1 }
 0x310   :  { %v1046_v40 = vpop.f32.mrf.mxu1 }
 0x311   :  { %1056 = vsyncpa [#allocation4], 1 }
 0x312   :  { %1057 = vsyncpa [#allocation6], 1 }
 0x313   :  { %1058 = vsyncpa [#allocation9], 1 }

</bundles_post_ra>
